<compile_context>
chip_gen: v7x
topology: tpu7x:2x2x1
jax: 0.10.0
libtpu: 0.0.40
codegen_flags: <defaults>
</compile_context>

<pallas_src>
import jax
import jax.numpy as jnp
import numpy as np
from jax.experimental import pallas as pl
from jax.experimental.pallas import tpu as pltpu


def make_cblock_kernel(C, H, W, K, bb, eps=1e-5):
    """Kernel processing one batch block of `bb` row-stacked samples per grid step."""
    P = K // 2
    WC = W * C
    Mr = bb * H
    inv_n = 1.0 / float(H * WC)

    def kernel(lhs1_ref, w1_ref, b1_ref, w2_ref, b2_ref, sel_ref, g_ref, be_ref,
               o_ref):
        # lhs1_ref : (Mr, K*WC)  f32  row-im2col input; lane block 0 == raw input
        # w1_ref   : (K*WC, WC)  bf16 conv1 banded weights (kh folded into rows)
        # b1_ref   : (1, WC)     f32
        # w2_ref   : (K, WC, WC) bf16 conv2 band weights per vertical tap
        # b2_ref   : (1, WC)     f32
        # sel_ref  : (K, Mr, Mr) bf16 0/1 row-shift selectors (per-sample halo)
        # g_ref    : (H, WC)     f32  LayerNorm gamma (slab layout)
        # be_ref   : (H, WC)     f32  LayerNorm beta  (slab layout)
        # o_ref    : (Mr, WC)    f32

        lhs1 = lhs1_ref[...]

        # ---- conv1: a single MXU matmul (bf16 operands, f32 accumulation) ----
        acc1 = jnp.dot(lhs1.astype(jnp.bfloat16), w1_ref[...],
                       preferred_element_type=jnp.float32)            # (Mr, WC)
        act = jnp.maximum(acc1 + b1_ref[...], 0.0).astype(jnp.bfloat16)

        # ---- conv2: center tap directly; off-center taps shift rows through exact
        # 0/1 selector matmuls (keeps everything sublane-aligned, no scratch). ----
        y = jnp.dot(act, w2_ref[P], preferred_element_type=jnp.float32)
        for kh in range(K):
            if kh == P:
                continue
            act_sh = jnp.dot(sel_ref[kh], act,
                             preferred_element_type=jnp.float32).astype(jnp.bfloat16)
            y = y + jnp.dot(act_sh, w2_ref[kh],
                            preferred_element_type=jnp.float32)
        y = y + b2_ref[...]

        # ---- per-sample LayerNorm over (C,H,W) + affine + residual (all f32) ----
        for b in range(bb):
            r0 = b * H                        # multiple of 8 -> aligned slices
            yb = y[r0:r0 + H, :]
            col_s1 = jnp.sum(yb, axis=0, keepdims=True)        # sublane reduce
            col_s2 = jnp.sum(yb * yb, axis=0, keepdims=True)
            s1 = jnp.sum(col_s1, axis=1, keepdims=True)        # small lane reduce
            s2 = jnp.sum(col_s2, axis=1, keepdims=True)
            mean = s1 * inv_n
            var = s2 * inv_n - mean * mean    # one-pass stats (OK at these sizes)
            yn = (yb - mean) * jax.lax.rsqrt(var + eps)
            res = lhs1[r0:r0 + H, 0:WC]       # exact f32 residual, lane offset 0
            o_ref[r0:r0 + H, :] = yn * g_ref[...] + be_ref[...] + res

    return kernel


def _band_weights(w, W, K):
    """(Co, Ci, K, K) conv weights -> (K, W*Ci, W*Co) banded lane-mixing slabs.

    Band[kh][ji*Ci+ci, jo*Co+co] = w[co, ci, kh, ji-jo+P] when 0 <= ji-jo+P < K.
    "Same" padding along W is implicit (out-of-range taps simply have no entry).
    NOTE: the slabs are block-banded (density ~ K/W); fine while C/W are tiny
    (this kernel is overhead-bound) -- switch to a dense im2col contraction
    before scaling C*W up so the MXU does not multiply structural zeros.
    """
    Co, Ci, _, _ = w.shape
    P = K // 2
    bands = []
    for kh in range(K):
        m = jnp.zeros((W * Ci, W * Co), jnp.float32)
        for kw in range(K):
            s = np.zeros((W, W), np.float32)
            for jo in range(W):
                ji = jo + kw - P
                if 0 <= ji < W:
                    s[ji, jo] = 1.0
            m = m + jnp.kron(jnp.asarray(s), w[:, :, kh, kw].T)
        bands.append(m)
    return jnp.stack(bands, axis=0)


def _shift_selectors(H, bb, K):
    """0/1 selectors S[kh] of shape (bb*H, bb*H): S[kh][r, r + kh - P] = 1 inside
    each sample.  Left-multiplying by S[kh] shifts rows by kh-P with zero fill at
    each sample's top/bottom halo ("same" padding along H), exactly and without
    any sublane-unaligned slices."""
    P = K // 2
    Mr = bb * H
    sel = np.zeros((K, Mr, Mr), np.float32)
    for kh in range(K):
        d = kh - P
        for b in range(bb):
            for r in range(H):
                s = r + d
                if 0 <= s < H:
                    sel[kh, b * H + r, b * H + s] = 1.0
    return jnp.asarray(sel)


def cblock_forward(x, w1, b1, w2, b2, gamma, beta, eps=1e-5, batch_block=None):
    """x: (B, C, H, W) float32 (NCHW, PyTorch convention)."""
    B, C, H, W = x.shape
    _, _, K, _ = w1.shape
    P = K // 2
    WC = W * C
    KWC = K * WC

    # Default: two grid steps when possible so v7x can split the "parallel" axis
    # across its two TensorCores; on single-TC chips the extra step is ~0.35 us.
    if batch_block is None:
        bb = B // 2 if (B % 2 == 0 and B >= 2) else B
    else:
        bb = batch_block
    assert B % bb == 0, "batch_block must divide batch size"
    G = B // bb
    Mr = bb * H
    assert G == 1 or Mr % 8 == 0, "bb*H must be a multiple of 8 when grid > 1"

    # ---- layout glue (plain JAX / XLA) ----
    # slab layout: row = spatial row, lane = w*C + c (channels fastest).
    xs = jnp.transpose(x, (0, 2, 3, 1)).reshape(B, H, WC).astype(jnp.float32)
    xpadH = jnp.pad(xs, ((0, 0), (P, P), (0, 0)))                    # (B, H+2P, WC)
    # row-im2col with the CENTER tap first, so lhs1[:, 0:WC] is the raw input
    # (used in-kernel as the exact f32 residual at lane offset 0).
    kh_order = [P] + [k for k in range(K) if k != P]
    lhs1 = jnp.concatenate([xpadH[:, k:k + H, :] for k in kh_order], axis=-1)
    lhs1 = lhs1.reshape(B * H, KWC)

    bands1 = _band_weights(w1, W, K)                                  # (K, WC, WC)
    bands2 = _band_weights(w2, W, K)
    rhs1 = jnp.concatenate([bands1[k] for k in kh_order], axis=0).astype(jnp.bfloat16)
    w2b = bands2.astype(jnp.bfloat16)                                 # (K, WC, WC)
    selb = _shift_selectors(H, bb, K).astype(jnp.bfloat16)            # (K, Mr, Mr)

    b1t = jnp.tile(b1, W).reshape(1, WC).astype(jnp.float32)
    b2t = jnp.tile(b2, W).reshape(1, WC).astype(jnp.float32)
    gamma_s = jnp.transpose(gamma, (1, 2, 0)).reshape(H, WC).astype(jnp.float32)
    beta_s = jnp.transpose(beta, (1, 2, 0)).reshape(H, WC).astype(jnp.float32)

    kernel = make_cblock_kernel(C, H, W, K, bb, eps)

    out_slab = pl.pallas_call(
        kernel,
        out_shape=jax.ShapeDtypeStruct((B * H, WC), jnp.float32),
        grid_spec=pltpu.PrefetchScalarGridSpec(
            num_scalar_prefetch=0,
            grid=(G,),
            in_specs=[
                pl.BlockSpec((Mr, KWC), lambda g: (g, 0)),        # row-im2col input
                pl.BlockSpec((KWC, WC), lambda g: (0, 0)),        # conv1 weights
                pl.BlockSpec((1, WC), lambda g: (0, 0)),          # conv1 bias
                pl.BlockSpec((K, WC, WC), lambda g: (0, 0, 0)),   # conv2 band weights
                pl.BlockSpec((1, WC), lambda g: (0, 0)),          # conv2 bias
                pl.BlockSpec((K, Mr, Mr), lambda g: (0, 0, 0)),   # row-shift selectors
                pl.BlockSpec((H, WC), lambda g: (0, 0)),          # LN gamma
                pl.BlockSpec((H, WC), lambda g: (0, 0)),          # LN beta
            ],
            out_specs=pl.BlockSpec((Mr, WC), lambda g: (g, 0)),
        ),
        compiler_params=pltpu.CompilerParams(
            dimension_semantics=("parallel",),
            vmem_limit_bytes=32 * 1024 * 1024),
    )(lhs1, rhs1, b1t, w2b, b2t, selb, gamma_s, beta_s)

    # unpack slab layout: [b*H + h, w*C + c] -> NCHW
    out = out_slab.reshape(B, H, W, C)
    return jnp.transpose(out, (0, 3, 1, 2))


def ref_forward(x, w1, b1, w2, b2, gamma, beta, eps=1e-5):
    """Pure-JAX f32 reference matching the PyTorch module semantics."""
    dn = jax.lax.conv_dimension_numbers(x.shape, w1.shape, ('NCHW', 'OIHW', 'NCHW'))
    y = jax.lax.conv_general_dilated(x, w1, (1, 1), 'SAME', dimension_numbers=dn,
                                     precision=jax.lax.Precision.HIGHEST)
    y = y + b1[None, :, None, None]
    y = jnp.maximum(y, 0.0)
    y = jax.lax.conv_general_dilated(y, w2, (1, 1), 'SAME', dimension_numbers=dn,
                                     precision=jax.lax.Precision.HIGHEST)
    y = y + b2[None, :, None, None]
    mean = jnp.mean(y, axis=(1, 2, 3), keepdims=True)
    var = jnp.mean((y - mean) ** 2, axis=(1, 2, 3), keepdims=True)
    yn = (y - mean) * jax.lax.rsqrt(var + eps)
    return yn * gamma[None] + beta[None] + x


if __name__ == "__main__":
    # cblock(hc=4, ksize=3, feature_size=[16, 16]); batch=2
    B, C, H, W, K = 2, 4, 16, 16, 3
    key = jax.random.PRNGKey(0)
    ks = jax.random.split(key, 7)

    x = jax.random.normal(ks[0], (B, C, H, W), jnp.float32)

    bound = 1.0 / np.sqrt(C * K * K)
    w1 = jax.random.uniform(ks[1], (C, C, K, K), jnp.float32, -bound, bound)
    b1 = jax.random.uniform(ks[2], (C,), jnp.float32, -bound, bound)
    w2 = jax.random.uniform(ks[3], (C, C, K, K), jnp.float32, -bound, bound)
    b2 = jax.random.uniform(ks[4], (C,), jnp.float32, -bound, bound)
    gamma = 1.0 + 0.1 * jax.random.normal(ks[5], (C, H, W), jnp.float32)
    beta = 0.1 * jax.random.normal(ks[6], (C, H, W), jnp.float32)

    out = cblock_forward(x, w1, b1, w2, b2, gamma, beta)
    out = jax.block_until_ready(out)

    ref = ref_forward(x, w1, b1, w2, b2, gamma, beta)
    assert out.shape == (B, C, H, W)
    # Tolerance accounts for bf16 MXU operands (f32 accumulation); LayerNorm,
    # biases, ReLU, residual and the 0/1 selector matmuls are exact in f32/bf16.
    np.testing.assert_allclose(np.asarray(out), np.asarray(ref), atol=2e-2, rtol=2e-2)
    print("KERNEL_OK")
</pallas_src>

<mosaic_0001>
module attributes {stable_mosaic.version = 11 : i64} {
  func.func @kernel(%arg0: i32, %arg1: memref<16x192xf32, #tpu.memory_space<vmem>>, %arg2: memref<192x64xbf16, #tpu.memory_space<vmem>>, %arg3: memref<1x64xf32, #tpu.memory_space<vmem>>, %arg4: memref<3x64x64xbf16, #tpu.memory_space<vmem>>, %arg5: memref<1x64xf32, #tpu.memory_space<vmem>>, %arg6: memref<3x16x16xbf16, #tpu.memory_space<vmem>>, %arg7: memref<16x64xf32, #tpu.memory_space<vmem>>, %arg8: memref<16x64xf32, #tpu.memory_space<vmem>>, %arg9: memref<16x64xf32, #tpu.memory_space<vmem>>) attributes {dimension_semantics = [#tpu.dimension_semantics<parallel>], iteration_bounds = array<i64: 2>, scalar_prefetch = 0 : i64, scratch_operands = 0 : i64, tpu.core_type = #tpu.core_type<tc>, window_params = [{transform_indices = @transform_0, window_bounds = array<i64: 16, 192>}, {pipeline_mode = #tpu.pipeline_mode<synchronous>, transform_indices = @transform_1, window_bounds = array<i64: 192, 64>}, {pipeline_mode = #tpu.pipeline_mode<synchronous>, transform_indices = @transform_2, window_bounds = array<i64: 1, 64>}, {pipeline_mode = #tpu.pipeline_mode<synchronous>, transform_indices = @transform_3, window_bounds = array<i64: 3, 64, 64>}, {pipeline_mode = #tpu.pipeline_mode<synchronous>, transform_indices = @transform_4, window_bounds = array<i64: 1, 64>}, {pipeline_mode = #tpu.pipeline_mode<synchronous>, transform_indices = @transform_5, window_bounds = array<i64: 3, 16, 16>}, {pipeline_mode = #tpu.pipeline_mode<synchronous>, transform_indices = @transform_6, window_bounds = array<i64: 16, 64>}, {pipeline_mode = #tpu.pipeline_mode<synchronous>, transform_indices = @transform_7, window_bounds = array<i64: 16, 64>}, {transform_indices = @transform_8, window_bounds = array<i64: 16, 64>}]} {
    %c0 = arith.constant 0 : index
    %c0_0 = arith.constant 0 : index
    %0 = vector.load %arg1[%c0, %c0_0] : memref<16x192xf32, #tpu.memory_space<vmem>>, vector<16x192xf32>
    %1 = arith.truncf %0 : vector<16x192xf32> to vector<16x192xbf16>
    %c0_1 = arith.constant 0 : index
    %c0_2 = arith.constant 0 : index
    %2 = vector.load %arg2[%c0_1, %c0_2] : memref<192x64xbf16, #tpu.memory_space<vmem>>, vector<192x64xbf16>
    %cst = arith.constant dense<0.000000e+00> : vector<16x64xf32>
    %3 = tpu.matmul %1, %2, %cst {dimension_numbers = #tpu.dot_dimension_numbers<[1], [0], [0], [1], [0, 0, 1, 1], [], []>} : vector<16x192xbf16>, vector<192x64xbf16>, vector<16x64xf32> -> vector<16x64xf32>
    %c0_3 = arith.constant 0 : index
    %c0_4 = arith.constant 0 : index
    %4 = vector.load %arg3[%c0_3, %c0_4] : memref<1x64xf32, #tpu.memory_space<vmem>>, vector<1x64xf32>
    %5 = vector.broadcast %4 : vector<1x64xf32> to vector<16x64xf32>
    %6 = arith.addf %3, %5 : vector<16x64xf32>
    %cst_5 = arith.constant 0.000000e+00 : f32
    %7 = vector.broadcast %cst_5 : f32 to vector<16x64xf32>
    %8 = arith.maximumf %6, %7 : vector<16x64xf32>
    %9 = arith.truncf %8 : vector<16x64xf32> to vector<16x64xbf16>
    %c1 = arith.constant 1 : index
    %c0_6 = arith.constant 0 : index
    %c0_7 = arith.constant 0 : index
    %10 = vector.load %arg4[%c1, %c0_6, %c0_7] : memref<3x64x64xbf16, #tpu.memory_space<vmem>>, vector<1x64x64xbf16>
    %11 = vector.shape_cast %10 : vector<1x64x64xbf16> to vector<64x64xbf16>
    %cst_8 = arith.constant dense<0.000000e+00> : vector<16x64xf32>
    %12 = tpu.matmul %9, %11, %cst_8 {dimension_numbers = #tpu.dot_dimension_numbers<[1], [0], [0], [1], [0, 0, 1, 1], [], []>} : vector<16x64xbf16>, vector<64x64xbf16>, vector<16x64xf32> -> vector<16x64xf32>
    %c0_9 = arith.constant 0 : index
    %c0_10 = arith.constant 0 : index
    %c0_11 = arith.constant 0 : index
    %13 = vector.load %arg6[%c0_9, %c0_10, %c0_11] : memref<3x16x16xbf16, #tpu.memory_space<vmem>>, vector<1x16x16xbf16>
    %14 = vector.shape_cast %13 : vector<1x16x16xbf16> to vector<16x16xbf16>
    %cst_12 = arith.constant dense<0.000000e+00> : vector<16x64xf32>
    %15 = tpu.matmul %14, %9, %cst_12 {dimension_numbers = #tpu.dot_dimension_numbers<[1], [0], [0], [1], [0, 0, 1, 1], [], []>} : vector<16x16xbf16>, vector<16x64xbf16>, vector<16x64xf32> -> vector<16x64xf32>
    %16 = arith.truncf %15 : vector<16x64xf32> to vector<16x64xbf16>
    %c0_13 = arith.constant 0 : index
    %c0_14 = arith.constant 0 : index
    %c0_15 = arith.constant 0 : index
    %17 = vector.load %arg4[%c0_13, %c0_14, %c0_15] : memref<3x64x64xbf16, #tpu.memory_space<vmem>>, vector<1x64x64xbf16>
    %18 = vector.shape_cast %17 : vector<1x64x64xbf16> to vector<64x64xbf16>
    %cst_16 = arith.constant dense<0.000000e+00> : vector<16x64xf32>
    %19 = tpu.matmul %16, %18, %cst_16 {dimension_numbers = #tpu.dot_dimension_numbers<[1], [0], [0], [1], [0, 0, 1, 1], [], []>} : vector<16x64xbf16>, vector<64x64xbf16>, vector<16x64xf32> -> vector<16x64xf32>
    %20 = arith.addf %12, %19 : vector<16x64xf32>
    %c2 = arith.constant 2 : index
    %c0_17 = arith.constant 0 : index
    %c0_18 = arith.constant 0 : index
    %21 = vector.load %arg6[%c2, %c0_17, %c0_18] : memref<3x16x16xbf16, #tpu.memory_space<vmem>>, vector<1x16x16xbf16>
    %22 = vector.shape_cast %21 : vector<1x16x16xbf16> to vector<16x16xbf16>
    %cst_19 = arith.constant dense<0.000000e+00> : vector<16x64xf32>
    %23 = tpu.matmul %22, %9, %cst_19 {dimension_numbers = #tpu.dot_dimension_numbers<[1], [0], [0], [1], [0, 0, 1, 1], [], []>} : vector<16x16xbf16>, vector<16x64xbf16>, vector<16x64xf32> -> vector<16x64xf32>
    %24 = arith.truncf %23 : vector<16x64xf32> to vector<16x64xbf16>
    %c2_20 = arith.constant 2 : index
    %c0_21 = arith.constant 0 : index
    %c0_22 = arith.constant 0 : index
    %25 = vector.load %arg4[%c2_20, %c0_21, %c0_22] : memref<3x64x64xbf16, #tpu.memory_space<vmem>>, vector<1x64x64xbf16>
    %26 = vector.shape_cast %25 : vector<1x64x64xbf16> to vector<64x64xbf16>
    %cst_23 = arith.constant dense<0.000000e+00> : vector<16x64xf32>
    %27 = tpu.matmul %24, %26, %cst_23 {dimension_numbers = #tpu.dot_dimension_numbers<[1], [0], [0], [1], [0, 0, 1, 1], [], []>} : vector<16x64xbf16>, vector<64x64xbf16>, vector<16x64xf32> -> vector<16x64xf32>
    %28 = arith.addf %20, %27 : vector<16x64xf32>
    %c0_24 = arith.constant 0 : index
    %c0_25 = arith.constant 0 : index
    %29 = vector.load %arg5[%c0_24, %c0_25] : memref<1x64xf32, #tpu.memory_space<vmem>>, vector<1x64xf32>
    %30 = vector.broadcast %29 : vector<1x64xf32> to vector<16x64xf32>
    %31 = arith.addf %28, %30 : vector<16x64xf32>
    %cst_26 = arith.constant dense<0.000000e+00> : vector<64xf32>
    %32 = vector.multi_reduction <add>, %31, %cst_26 [0] : vector<16x64xf32> to vector<64xf32>
    %33 = vector.shape_cast %32 : vector<64xf32> to vector<1x64xf32>
    %34 = arith.mulf %31, %31 : vector<16x64xf32>
    %cst_27 = arith.constant dense<0.000000e+00> : vector<64xf32>
    %35 = vector.multi_reduction <add>, %34, %cst_27 [0] : vector<16x64xf32> to vector<64xf32>
    %36 = vector.shape_cast %35 : vector<64xf32> to vector<1x64xf32>
    %cst_28 = arith.constant dense<0.000000e+00> : vector<1xf32>
    %37 = vector.multi_reduction <add>, %33, %cst_28 [1] : vector<1x64xf32> to vector<1xf32>
    %38 = vector.shape_cast %37 : vector<1xf32> to vector<1x1xf32>
    %cst_29 = arith.constant dense<0.000000e+00> : vector<1xf32>
    %39 = vector.multi_reduction <add>, %36, %cst_29 [1] : vector<1x64xf32> to vector<1xf32>
    %40 = vector.shape_cast %39 : vector<1xf32> to vector<1x1xf32>
    %cst_30 = arith.constant 9.765625E-4 : f32
    %41 = vector.broadcast %cst_30 : f32 to vector<1x1xf32>
    %42 = arith.mulf %38, %41 : vector<1x1xf32>
    %cst_31 = arith.constant 9.765625E-4 : f32
    %43 = vector.broadcast %cst_31 : f32 to vector<1x1xf32>
    %44 = arith.mulf %40, %43 : vector<1x1xf32>
    %45 = arith.mulf %42, %42 : vector<1x1xf32>
    %46 = arith.subf %44, %45 : vector<1x1xf32>
    %47 = vector.broadcast %42 : vector<1x1xf32> to vector<16x64xf32>
    %48 = arith.subf %31, %47 : vector<16x64xf32>
    %cst_32 = arith.constant 9.99999974E-6 : f32
    %49 = vector.broadcast %cst_32 : f32 to vector<1x1xf32>
    %50 = arith.addf %46, %49 : vector<1x1xf32>
    %51 = math.rsqrt %50 : vector<1x1xf32>
    %52 = vector.broadcast %51 : vector<1x1xf32> to vector<16x64xf32>
    %53 = arith.mulf %48, %52 : vector<16x64xf32>
    %54 = vector.extract_strided_slice %0 {offsets = [0, 0], sizes = [16, 64], strides = [1, 1]} : vector<16x192xf32> to vector<16x64xf32>
    %c0_33 = arith.constant 0 : index
    %c0_34 = arith.constant 0 : index
    %55 = vector.load %arg7[%c0_33, %c0_34] : memref<16x64xf32, #tpu.memory_space<vmem>>, vector<16x64xf32>
    %56 = arith.mulf %53, %55 : vector<16x64xf32>
    %c0_35 = arith.constant 0 : index
    %c0_36 = arith.constant 0 : index
    %57 = vector.load %arg8[%c0_35, %c0_36] : memref<16x64xf32, #tpu.memory_space<vmem>>, vector<16x64xf32>
    %58 = arith.addf %56, %57 : vector<16x64xf32>
    %59 = arith.addf %58, %54 : vector<16x64xf32>
    %c0_37 = arith.constant 0 : index
    %c0_38 = arith.constant 0 : index
    %60 = vector.load %arg9[%c0_37, %c0_38] : memref<16x64xf32, #tpu.memory_space<vmem>>, vector<16x64xf32>
    tpu.vector_store %arg9[%c0_37, %c0_38], %59 {strides = array<i32>} : memref<16x64xf32, #tpu.memory_space<vmem>>, vector<16x64xf32>,
    return
  }
  func.func @transform_0(%arg0: i32) -> (i32, i32) {
    %c0_i32 = arith.constant 0 : i32
    %c0_i32_0 = arith.constant 0 : i32
    return %arg0, %c0_i32 : i32, i32
  }
  func.func @transform_1(%arg0: i32) -> (i32, i32) {
    %c0_i32 = arith.constant 0 : i32
    %c0_i32_0 = arith.constant 0 : i32
    %c0_i32_1 = arith.constant 0 : i32
    return %c0_i32, %c0_i32_0 : i32, i32
  }
  func.func @transform_2(%arg0: i32) -> (i32, i32) {
    %c0_i32 = arith.constant 0 : i32
    %c0_i32_0 = arith.constant 0 : i32
    %c0_i32_1 = arith.constant 0 : i32
    return %c0_i32, %c0_i32_0 : i32, i32
  }
  func.func @transform_3(%arg0: i32) -> (i32, i32, i32) {
    %c0_i32 = arith.constant 0 : i32
    %c0_i32_0 = arith.constant 0 : i32
    %c0_i32_1 = arith.constant 0 : i32
    %c0_i32_2 = arith.constant 0 : i32
    return %c0_i32, %c0_i32_0, %c0_i32_1 : i32, i32, i32
  }
  func.func @transform_4(%arg0: i32) -> (i32, i32) {
    %c0_i32 = arith.constant 0 : i32
    %c0_i32_0 = arith.constant 0 : i32
    %c0_i32_1 = arith.constant 0 : i32
    return %c0_i32, %c0_i32_0 : i32, i32
  }
  func.func @transform_5(%arg0: i32) -> (i32, i32, i32) {
    %c0_i32 = arith.constant 0 : i32
    %c0_i32_0 = arith.constant 0 : i32
    %c0_i32_1 = arith.constant 0 : i32
    %c0_i32_2 = arith.constant 0 : i32
    return %c0_i32, %c0_i32_0, %c0_i32_1 : i32, i32, i32
  }
  func.func @transform_6(%arg0: i32) -> (i32, i32) {
    %c0_i32 = arith.constant 0 : i32
    %c0_i32_0 = arith.constant 0 : i32
    %c0_i32_1 = arith.constant 0 : i32
    return %c0_i32, %c0_i32_0 : i32, i32
  }
  func.func @transform_7(%arg0: i32) -> (i32, i32) {
    %c0_i32 = arith.constant 0 : i32
    %c0_i32_0 = arith.constant 0 : i32
    %c0_i32_1 = arith.constant 0 : i32
    return %c0_i32, %c0_i32_0 : i32, i32
  }
  func.func @transform_8(%arg0: i32) -> (i32, i32) {
    %c0_i32 = arith.constant 0 : i32
    %c0_i32_0 = arith.constant 0 : i32
    return %arg0, %c0_i32 : i32, i32
  }
}

</mosaic_0001>

<bundles_post_ra>
// kernel: tpu_custom_call.1
= control target key start
LH: loop header
LB: loop body
LE: loop exit
PB: predicated region body
PF: predicated region fallthrough
CT: control target
= control target key end

     0   :  { %13 = vsyncpa [#allocation3], 0  ;;  %s1719_s0 = inlined_call_operand.vmem [shape: f32[32,192], index: 0, kind: input, shape index: {}]   ;;  %s1720_s1 = inlined_call_operand.vmem [shape: bf16[192,64], index: 1, kind: input, shape index: {}]   ;;  %s1721_s2 = inlined_call_operand.vmem [shape: f32[1,64], index: 2, kind: input, shape index: {}]   ;;  %s1722_s3 = inlined_call_operand.vmem [shape: bf16[3,64,64], index: 3, kind: input, shape index: {}]   ;;  %s1723_s4 = inlined_call_operand.vmem [shape: f32[1,64], index: 4, kind: input, shape index: {}]   ;;  %s1724_s5 = inlined_call_operand.hbm [shape: bf16[3,16,16], index: 5, kind: input, shape index: {}]   ;;  %s1725_s6 = inlined_call_operand.vmem [shape: f32[16,64], index: 6, kind: input, shape index: {}]   ;;  %s1726_s7 = inlined_call_operand.hbm [shape: f32[16,64], index: 7, kind: input, shape index: {}]   ;;  %s1727_s8 = inlined_call_operand.hbm [shape: f32[32,64], index: 8, kind: output, shape index: {}]  }
   0x1   :  { %14 = vsyncpa [#allocation6], 0 }
   0x2   :  { %15 = vsyncpa [#allocation4], 0 }
   0x3   :  { %17 = vsyncpa [#allocation4 + $0x1], 0  ;;  %s1409_s27 = smov 0   ;;  %s1411_s28 = smov 0  }
   0x4   :  { %s1413_s29 = smov 0   ;;  %s1415_s30 = smov 0  }
   0x5 LB: > { %1732 = sst [smem:[#allocation11_spill]] %s1346_s29  ;;  %s1430_s9 = sadd.s32 4294967295, %s1350_s30   ;;  %s1350_s30 = sphi %s1415_s30, %s1750_s30   ;;  %s1346_s29 = sphi %s1413_s29, %s1749_s29   ;;  %s1342_s28 = sphi %s1411_s28, %s1748_s28   ;;  %s1338_s27 = sphi %s1409_s27, %s1747_s27  }
   0x6   : > { %s991_s10 = sadd.s32 4294967294, %s1350_s30   ;;  %s1434_s11 = sadd.s32 1, %s1350_s30  }
   0x7   : > { %s203_s12 = sadd.s32 1, %s1346_s29  ;;  %s200_s13 = ssub.s32 %s1350_s30, %s1434_s11 }
   0x8   : > { %p213_p0 = scmp.ne.s32.totalorder %s1346_s29, %s1342_s28  ;;  %p201_p1 = scmp.eq.s32.totalorder %s200_s13, 0 }
   0x9   : > { %p214_p2 = scmp.eq.s32.totalorder %s1430_s9, 1  ;;  %p219_p3 = scmp.ne.s32.totalorder %s1342_s28, %s1338_s27 }
   0xa   : > { %p220_p4 = scmp.eq.s32.totalorder %s991_s10, 1  ;;  %p992_p7 = scmp.ge.s32.totalorder %s1350_s30, 1 }
   0xb   : > { %s1445_s14 = scalar_select %p201_p1, %s1346_s29, %s203_s12  }
   0xc   : > { %p1447_p5 = por %p214_p2, %p213_p0  ;;  %p1451_p6 = por %p220_p4, %p219_p3 }
   0xd   : > { %1733 = sst [smem:[#allocation12_spill]] %s1445_s14  ;;  %p227_p8 = scmp.lt.s32.totalorder %s1350_s30, 3 }
   0xe   : > { %s1734_s15 = scalar_select %p1447_p5, 1, 0 }
   0xf   : > { %s1735_s16 = scalar_select %p1451_p6, 1, 0 }
  0x10   : > { %p1728_p9 = scmp.eq.s32.totalorder %s1430_s9, 0  ;;  %p1458_p10 = pnand %p992_p7, %p227_p8 }
  0x11   : > { %s1352_s18 = smov [#allocation2]   ;;  %s1353_s21 = smov [#allocation5]  }
  0x12   : > { %s1736_s17 = scalar_select %p1458_p10, 1, 0 }
  0x13   : > { %s251_s19 = sshll.u32 %s1352_s18, 4  ;;  %p1137_p11 = pneg %p1458_p10  ;;  %s252_s19 = int_to_ptr.vmem [resolvable:$true] %s251_s19 }
  0x14   : > { %s267_s22 = sshll.u32 %s1353_s21, 4  ;;  %s1224_s25 = scalar_lea.hbm %s1724_s5, 384  ;;  %s1470_s22 = int_to_ptr.vmem [resolvable:$true] %s267_s22 }
  0x15   : > { %p1466_p12 = pnand %p1728_p9, %p1137_p11  ;;  %p1225_p13 = scmp.ne.s32.totalorder %s1724_s5, %s1224_s25 }
  0x16   : > { %p1231_p3 = scmp.lt.u32.totalorder %s1224_s25, %s1724_s5 }
  0x17   : > { %p1226_p0 = pneg %p1466_p12 }
  0x19   : > { %p1227_p1 = pnand %p1226_p0, %p1225_p13 }
  0x1b   : > { %p1228_p2 = pneg %p1227_p1 }
  0x1d   : > { %p1233_p4 = pnand %p1231_p3, %p1228_p2 }
  0x1f   : > { %1236 = shalt.err (!%p1233_p4)
}
  0x20   : > { %s1237_s18 = scalar_lea.vmem %s252_s19, 384  ;;  %p1245_p9 = scmp.lt.s32.totalorder %s252_s19, %s252_s19 }
  0x21   : > { %p1238_p7 = scmp.ne.s32.totalorder %s252_s19, %s1237_s18  ;;  %p1246_p6 = scmp.lt.s32.totalorder %s1237_s18, %s1237_s18 }
  0x23   : > { %p1240_p8 = pnand %p1238_p7, %p1226_p0  ;;  %p1247_p5 = por %p1246_p6, %p1245_p9 }
  0x25   : > { %p1241_p11 = pneg %p1240_p8 }
  0x27   : > { %p1248_p10 = pnand %p1247_p5, %p1241_p11 }
  0x29   : > { %1251 = shalt.err (!%p1248_p10)
}
  0x2a   : > { %s1354_s21 = smov 64   ;;  %s1355_s23 = smov 4  }
  0x2b   : > { %1140 = dma.hbm_to_vmem [thread:$0]  (!%p1466_p12), %s1724_s5, 384, %s252_s19, [#allocation3], %s1354_s21, %s1354_s21, %s1355_s23  }
  0x2c   : > { %s1252_s12 = scalar_lea.hbm %s1726_s7, 256 }
  0x2d   : > { %p1253_p13 = scmp.ne.s32.totalorder %s1726_s7, %s1252_s12  ;;  %p1259_p9 = scmp.lt.u32.totalorder %s1252_s12, %s1726_s7 }
  0x2f   : > { %p1255_p5 = pnand %p1253_p13, %p1226_p0 }
  0x31   : > { %p1256_p6 = pneg %p1255_p5 }
  0x33   : > { %p1261_p10 = pnand %p1259_p9, %p1256_p6 }
  0x35   : > { %1264 = shalt.err (!%p1261_p10)
}
  0x36   : > { %s1265_s19 = scalar_lea.vmem %s1470_s22, 256  ;;  %p1273_p4 = scmp.lt.s32.totalorder %s1470_s22, %s1470_s22 }
  0x37   : > { %p1266_p1 = scmp.ne.s32.totalorder %s1470_s22, %s1265_s19  ;;  %p1274_p7 = scmp.lt.s32.totalorder %s1265_s19, %s1265_s19 }
  0x39   : > { %p1268_p2 = pnand %p1266_p1, %p1226_p0  ;;  %p1275_p8 = por %p1274_p7, %p1273_p4 }
  0x3b   : > { %p1269_p3 = pneg %p1268_p2 }
  0x3d   : > { %p1276_p11 = pnand %p1275_p8, %p1269_p3 }
  0x3f   : > { %1279 = shalt.err (!%p1276_p11)
}
  0x40   : > { %s1356_s29 = smov 128   ;;  %s1357_s14 = smov 8  }
  0x41   : > { %1143 = dma.hbm_to_vmem [thread:$0]  (!%p1466_p12), %s1726_s7, 256, %s1470_s22, [#allocation6], %s1356_s29, %s1356_s29, %s1357_s14  }
  0x42   : > { %p1738_p13 = scmp.ne.s32.totalorder %s1736_s17, 0 }
  0x43   : > { %p1739_p0 = scmp.eq.s32.totalorder (!%p1738_p13), %s1430_s9, 0 }
  0x44   : > { %293 = sbr.rel (%p1738_p13) target bundleno = 1227 (0x4cb), region = 52 }
  0x4b   : > { %1325 = dma.done.wait (%p1739_p0), [#allocation3], 384   ;;  %p1740_p5 = pmov %p1739_p0 }
  0x4c   : > { %p1741_p6 = pmov %p1739_p0 }
  0x4d   : > { %1327 = vsyncadd (%p1740_p5), [#allocation3], 4294966912 }
  0x4e   : > { %1329 = dma.done.wait (%p1741_p6), [#allocation6], 256   ;;  %p1742_p9 = pmov %p1739_p0 }
  0x4f   : > { %v1358_v0 = vmov 0   ;;  %s1000_s20 = sshll.u32 %s1430_s9, 1  ;;  %v1196_v1 = vld [vmem:[%s1720_s1] sm:$0xff]   ;;  %v1197_v2 = vld [vmem:[%s1720_s1 + $0x8] sm:$0xff]   ;;  %v1198_v3 = vld [vmem:[%s1720_s1 + $0x10] sm:$0xff]   ;;  %vm450_vm0 = vcmask 523264  }
  0x50   : > { %1331 = vsyncadd (%p1742_p9), [#allocation6], 4294967040  ;;  %454 = vmatprep.subr.bf16.mxu0 %v1358_v0  ;;  %p333_p12 = scmp.lt.s32.totalorder %s1000_s20, 3  ;;  %v1199_v4 = vld [vmem:[%s1720_s1 + $0x18] sm:$0xff]   ;;  %v1200_v7 = vld [vmem:[%s1720_s1 + $0x20] sm:$0xff]   ;;  %v1359_v19 = vmov 0.0  }
  0x51   : > { %455 = vmatpush1.bf16.msra.mxu0 %v1196_v1  ;;  %v1201_v9 = vld [vmem:[%s1720_s1 + $0x28] sm:$0xff]   ;;  %v1202_v10 = vld [vmem:[%s1720_s1 + $0x30] sm:$0xff]   ;;  %v1203_v11 = vld [vmem:[%s1720_s1 + $0x38] sm:$0xff]   ;;  %1085 = vmatprep.subr.bf16.mxu1 %v1359_v19  ;;  %vm1360_vm1 = vmmov 0   ;;  %vm514_vm2 = vcmask 130048   ;;  %s329_s21 = sand.u32 1, %s1342_s28  }
  0x52   : > { %s1752_s20 = smov (!%p333_p12, %s1000_s20), 3  ;;  %456 = vmatprep.subr.bf16.mxu0 %v1358_v0  ;;  %v1204_v12 = vld [vmem:[%s1720_s1 + $0x40] sm:$0xff]   ;;  %v1205_v13 = vld [vmem:[%s1720_s1 + $0x48] sm:$0xff]   ;;  %v1206_v14 = vld [vmem:[%s1720_s1 + $0x50] sm:$0xff]   ;;  %1093 = vmatprep.mubr.msk.bf16.mxu1 %vm1360_vm1, %v1359_v19  ;;  %s999_s23 = sshll.u32 %s329_s21, 4 }
  0x53   : > { %s1058_s12 = sshll.u32 %s1752_s20, 4  ;;  %v1207_v15 = vld [vmem:[%s1720_s1 + $0x58] sm:$0xff]   ;;  %v1209_v20 = vld [vmem:[%s1722_s3] sm:$0xff]   ;;  %v1210_v21 = vld [vmem:[%s1722_s3 + $0x8] sm:$0xff]   ;;  %s1059_s24 = sshll.u32 %s1430_s9, 8 }
  0x54   : > { %s1542_s19 = scalar_lea.vmem %s1719_s0, %s1058_s12  ;;  %1086 = vmatpush3.bf16.msra.mxu1 %v1209_v20  ;;  %v1211_v22 = vld [vmem:[%s1722_s3 + $0x10] sm:$0xff]   ;;  %v1003_v23 = vld [vmem:[%s1721_s2] ss:$0 sm:$0xff]  ;;  %v1212_v34 = vld [vmem:[%s1722_s3 + $0x18] sm:$0xff]   ;;  %s331_s25 = scalar_lea.vmem [#allocation7], %s999_s23 }
  0x55   : > { %457 = vmatpush1.bf16.msra.mxu0 %v1197_v2  ;;  %v342_v5 = vld [vmem:[%s1542_s19 + $0x8] sm:$0xff]  ;;  %v344_v6 = vld [vmem:[%s1542_s19 + $0x18] sm:$0xff]  ;;  %v1575_v16 = vld [vmem:[%s1542_s19] sm:$0xff]  ;;  %1087 = vmatprep.subr.bf16.mxu1 %v1359_v19  ;;  %s907_s26 = sshll.u32 %s331_s25, 4  ;;  %s1670_s13 = scalar_lea.hbm %s1727_s8, %s1059_s24  ;;  %s1672_s26 = int_to_ptr.vmem [resolvable:$true] %s907_s26 }
  0x56   : > { %458 = vmatprep.subr.bf16.mxu0 %v1358_v0  ;;  %v346_v8 = vpack.c.bf16 %v344_v6, %v342_v5  ;;  %v1578_v17 = vld [vmem:[%s1542_s19 + $0x10] sm:$0xff]  ;;  %v1208_v33 = vld [vmem:[#allocation2] sm:$0xff]   ;;  %v1214_v41 = vld [vmem:[%s1722_s3 + $0x28] sm:$0xff]   ;;  %s1678_s9 = scalar_lea.sflag [#allocation4], %s329_s21  ;;  %s1280_s18 = scalar_lea.vmem %s1672_s26, 256 }
  0x57   : > { %v345_v18 = vpack.c.bf16 %v1578_v17, %v1575_v16  ;;  %v1213_v38 = vld [vmem:[%s1722_s3 + $0x20] sm:$0xff]   ;;  %v1215_v42 = vld [vmem:[%s1722_s3 + $0x30] sm:$0xff]   ;;  %v1216_v43 = vld [vmem:[%s1722_s3 + $0x38] sm:$0xff]   ;;  %p1281_p10 = scmp.ne.s32.totalorder %s1672_s26, %s1280_s18  ;;  %p1743_p1 = scmp.ne.s32.totalorder %s1734_s15, 0 }
  0x58   : > { %1016 = vmatprep.mubr.msk.bf16.mxu0 %vm450_vm0, %v346_v8  ;;  %1088 = vmatpush3.bf16.msra.mxu1 %v1210_v21  ;;  %v1217_v44 = vld [vmem:[#allocation2 + $0x10] sm:$0xff]   ;;  %v1218_v45 = vld [vmem:[%s1722_s3 + $0x40] sm:$0xff]   ;;  %v1219_v46 = vld [vmem:[%s1722_s3 + $0x48] sm:$0xff]   ;;  %s1361_s29 = smov [#allocation7]  }
  0x59   : > { %459 = vmatpush1.bf16.msra.mxu0 %v1198_v3  ;;  %1089 = vmatprep.subr.bf16.mxu1 %v1359_v19  ;;  %v1220_v47 = vld [vmem:[%s1722_s3 + $0x50] sm:$0xff]   ;;  %v1221_v48 = vld [vmem:[%s1722_s3 + $0x58] sm:$0xff]   ;;  %v1052_v1 = vld [vmem:[%s1723_s4] ss:$0 sm:$0xff]  ;;  %p1282_p2 = pnand %p1281_p10, %p1743_p1  ;;  %s1284_s14 = sshll.u32 %s1361_s29, 4  ;;  %s1285_s14 = int_to_ptr.vmem [resolvable:$false] %s1284_s14 }
  0x5a   : > { %460 = vmatprep.subr.bf16.mxu0 %v1358_v0  ;;  %s1286_s23 = scalar_lea.vmem %s1285_s14, 512  ;;  %p1287_p4 = scmp.lt.s32.totalorder %s1672_s26, %s1285_s14 }
  0x5b   : > { %p1283_p3 = pneg %p1282_p2  ;;  %p1288_p7 = scmp.lt.s32.totalorder %s1286_s23, %s1280_s18 }
  0x5c   : > { %1090 = vmatpush3.bf16.msra.mxu1 %v1211_v22 }
  0x5d   : > { %461 = vmatpush1.bf16.msra.mxu0 %v1199_v4  ;;  %1091 = vmatprep.subr.bf16.mxu1 %v1359_v19  ;;  %p1289_p8 = por %p1288_p7, %p1287_p4 }
  0x5e   : > { %462 = vmatprep.subr.bf16.mxu0 %v1358_v0 }
  0x5f   : > { %p1290_p11 = pnand %p1289_p8, %p1283_p3 }
  0x60   : > { %1092 = vmatpush3.bf16.msra.mxu1 %v1212_v34 }
  0x61   : > { %463 = vmatpush1.bf16.msra.mxu0 %v1200_v7  ;;  %1097 = vmatprep.subr.bf16.mxu1 %v1359_v19 }
  0x62   : > { %464 = vmatprep.subr.bf16.mxu0 %v1358_v0 }
  0x65   : > { %465 = vmatpush1.bf16.msra.mxu0 %v1201_v9 }
  0x66   : > { %466 = vmatprep.subr.bf16.mxu0 %v1358_v0 }
  0x69   : > { %467 = vmatpush1.bf16.msra.mxu0 %v1202_v10 }
  0x6a   : > { %468 = vmatprep.subr.bf16.mxu0 %v1358_v0 }
  0x6d   : > { %469 = vmatpush1.bf16.msra.mxu0 %v1203_v11 }
  0x6e   : > { %470 = vmatprep.subr.bf16.mxu0 %v1358_v0 }
  0x71   : > { %471 = vmatpush1.bf16.msra.mxu0 %v1204_v12 }
  0x72   : > { %472 = vmatprep.subr.bf16.mxu0 %v1358_v0 }
  0x75   : > { %473 = vmatpush1.bf16.msra.mxu0 %v1205_v13 }
  0x76   : > { %474 = vmatprep.subr.bf16.mxu0 %v1358_v0 }
  0x79   : > { %475 = vmatpush1.bf16.msra.mxu0 %v1206_v14 }
  0x7a   : > { %476 = vmatprep.subr.bf16.mxu0 %v1358_v0 }
  0x7d   : > { %477 = vmatpush1.bf16.msra.mxu0 %v1207_v15 }
  0x7e   : > { %1079 = vmatprep.subr.bf16.mxu0 %v1359_v19 }
  0x80   : > { %487 = vmatmul.mubr.bf16.vlgmr.msra.gmra.mrb[0].mxu0 %v345_v18 }
  0x81   : > { %1081 = vmatprep.mubr.msk.bf16.mxu0 %vm1360_vm1, %v1359_v19 }
 0x153   : > { %v488_v24 = vpop.f32.mrb[0].mxu0 }
 0x154   : > { %v489_v25 = vadd.f32 %v1003_v23, %v488_v24  ;;  %v490_v26 = vpop.f32.mrb[1].mxu0 }
 0x155   : > { %v491_v27 = vpop.f32.mrb[2].mxu0 }
 0x156   : > { %v492_v28 = vadd.f32 %v1003_v23, %v491_v27  ;;  %v493_v29 = vpop.f32.mrb[3].mxu0  ;;  %v495_v30 = vmax.f32 %v489_v25, 0.0 }
 0x158   : > { %v496_v31 = vmax.f32 %v492_v28, 0.0 }
 0x15a   : > { %v497_v32 = vpack.c.bf16 %v496_v31, %v495_v30 }
 0x15c   : > { %1080 = vmatpush3.bf16.msra.mxu0 %v497_v32 }
 0x15f   : > { %1082 = vmatmul.mubr.msk.bf16.vlgmr.msra.gmra.mrb[4].mxu0 %vm514_vm2, %v1208_v33 }
 0x232   : > { %v552_v35 = vpop.f32.mrb[4].mxu0 }
 0x233   : > { %v1083_v36 = vpop.f32.mrb[5].mxu0 }
 0x234   : > { %v555_v37 = vpop.f32.mrb[6].mxu0 }
 0x235   : > { %v559_v39 = vpack.c.bf16 %v555_v37, %v552_v35  ;;  %v1084_v40 = vpop.f32.mrb[7].mxu0 }
 0x237   : > { %1094 = vmatmul.mubr.msk.bf16.vlgmr.msra.gmra.mrb[0].mxu1 %vm450_vm0, %v559_v39 }
 0x238   : > { %1098 = vmatpush3.bf16.msra.mxu1 %v1213_v38  ;;  %1105 = vmatprep.mubr.msk.bf16.mxu1 %vm1360_vm1, %v1359_v19 }
 0x239   : > { %1099 = vmatprep.subr.bf16.mxu1 %v1359_v19 }
 0x23c   : > { %1100 = vmatpush3.bf16.msra.mxu1 %v1214_v41 }
 0x23d   : > { %1101 = vmatprep.subr.bf16.mxu1 %v1359_v19 }
 0x240   : > { %1102 = vmatpush3.bf16.msra.mxu1 %v1215_v42 }
 0x241   : > { %1103 = vmatprep.subr.bf16.mxu1 %v1359_v19 }
 0x244   : > { %1104 = vmatpush3.bf16.msra.mxu1 %v1216_v43  ;;  %v881_v43 = vld [vmem:[%s1725_s6] sm:$0xff] }
 0x245   : > { %1109 = vmatprep.subr.bf16.mxu1 %v1359_v19 }
 0x247   : > { %1106 = vmatmul.mubr.msk.bf16.vlgmr.msra.gmra.mrb[4].mxu1 %vm450_vm0, %v497_v32 }
 0x248   : > { %1110 = vmatpush3.bf16.msra.mxu1 %v497_v32  ;;  %1111 = vmatprep.mubr.msk.bf16.mxu1 %vm1360_vm1, %v1359_v19 }
 0x249   : > { %1115 = vmatprep.subr.bf16.mxu1 %v1359_v19 }
 0x24f   : > { %1112 = vmatmul.mubr.msk.bf16.vlgmr.msra.gmra.mrb[8].mxu1 %vm514_vm2, %v1217_v44  ;;  %v882_v44 = vld [vmem:[%s1725_s6 + $0x8] sm:$0xff] }
 0x250   : > { %1123 = vmatprep.mubr.msk.bf16.mxu1 %vm1360_vm1, %v1359_v19  ;;  %1116 = vmatpush3.bf16.msra.mxu1 %v1218_v45 }
 0x251   : > { %1117 = vmatprep.subr.bf16.mxu1 %v1359_v19 }
 0x254   : > { %1118 = vmatpush3.bf16.msra.mxu1 %v1219_v46 }
 0x255   : > { %1119 = vmatprep.subr.bf16.mxu1 %v1359_v19 }
 0x258   : > { %1120 = vmatpush3.bf16.msra.mxu1 %v1220_v47  ;;  %v885_v47 = vld [vmem:[#allocation5] sm:$0xff] }
 0x259   : > { %1121 = vmatprep.subr.bf16.mxu1 %v1359_v19 }
 0x25c   : > { %1122 = vmatpush3.bf16.msra.mxu1 %v1221_v48  ;;  %v886_v48 = vld [vmem:[#allocation5 + $0x8] sm:$0xff] }
 0x30a   : > { %v629_v49 = vpop.f32.mrb[0].mxu1 }
 0x30b   : > { %v1095_v50 = vpop.f32.mrb[1].mxu1 }
 0x30c   : > { %v632_v51 = vpop.f32.mrb[2].mxu1 }
 0x30d   : > { %v1096_v52 = vpop.f32.mrb[3].mxu1 }
 0x31a   : > { %v697_v53 = vpop.f32.mrb[4].mxu1 }
 0x31b   : > { %v698_v54 = vadd.f32 %v697_v53, %v629_v49  ;;  %v1107_v55 = vpop.f32.mrb[5].mxu1 }
 0x31c   : > { %v700_v56 = vpop.f32.mrb[6].mxu1 }
 0x31d   : > { %v701_v57 = vadd.f32 %v700_v56, %v632_v51  ;;  %v1108_v58 = vpop.f32.mrb[7].mxu1 }
 0x322   : > { %v749_v59 = vpop.f32.mrb[8].mxu1 }
 0x323   : > { %v1113_v60 = vpop.f32.mrb[9].mxu1 }
 0x324   : > { %v752_v61 = vpop.f32.mrb[10].mxu1 }
 0x325   : > { %v756_v62 = vpack.c.bf16 %v752_v61, %v749_v59  ;;  %v1114_v63 = vpop.f32.mrb[11].mxu1 }
 0x327   : > { %1124 = vmatmul.mubr.msk.bf16.vlgmr.msra.gmra.mrb[12].mxu1 %vm450_vm0, %v756_v62 }
 0x3fa   : > { %v827_v0 = vpop.f32.mrb[12].mxu1 }
 0x3fb   : > { %v834_v2 = vadd.f32 %v827_v0, %v698_v54  ;;  %v1125_v3 = vpop.f32.mrb[13].mxu1 }
 0x3fc   : > { %v830_v4 = vpop.f32.mrb[14].mxu1 }
 0x3fd   : > { %v843_v5 = vadd.f32 %v1052_v1, %v834_v2  ;;  %v835_v6 = vadd.f32 %v830_v4, %v701_v57  ;;  %v1126_v7 = vpop.f32.mrb[15].mxu1 }
 0x3ff   : > { %v854_v8 = vmul.f32 %v843_v5, %v843_v5  ;;  %v844_v9 = vadd.f32 %v1052_v1, %v835_v6  ;;  %v845_v10 = vsel %vm450_vm0, %v843_v5, 0.0 }
 0x401   : > { %v846_v11 = vsel %vm450_vm0, %v844_v9, 0.0  ;;  %v855_v12 = vmul.f32 %v844_v9, %v844_v9  ;;  %v856_v14 = vsel %vm450_vm0, %v854_v8, 0.0 }
 0x402   : > { %v847_v13 = vadd.f32 %v846_v11, %v845_v10 }
 0x403   : > { %v857_v15 = vsel %vm450_vm0, %v855_v12, 0.0 }
 0x404   : > { %v848_v18 = vrot.slane %v847_v13, 4  ;;  %v858_v19 = vadd.f32 %v857_v15, %v856_v14 }
 0x406   : > { %v849_v20 = vadd.f32 %v848_v18, %v847_v13  ;;  %v859_v21 = vrot.slane %v858_v19, 4 }
 0x408   : > { %v850_v22 = vrot.slane %v849_v20, 2  ;;  %v860_v23 = vadd.f32 %v859_v21, %v858_v19 }
 0x40a   : > { %v851_v24 = vadd.f32 %v850_v22, %v849_v20  ;;  %v861_v25 = vrot.slane %v860_v23, 2 }
 0x40c   : > { %v852_v26 = vrot.slane %v851_v24, 1  ;;  %v862_v27 = vadd.f32 %v861_v25, %v860_v23 }
 0x40e   : > { %v853_v28 = vadd.f32 %v852_v26, %v851_v24  ;;  %v863_v29 = vrot.slane %v862_v27, 1 }
 0x410   : > { %v865_v30 = vsel %vm450_vm0, %v853_v28, 0.0  ;;  %v864_v31 = vadd.f32 %v863_v29, %v862_v27 }
 0x411   : > { %866 = vadd.xlane.f32.xlu0 %v865_v30 }
 0x412   : > { %v868_v32 = vsel %vm450_vm0, %v864_v31, 0.0 }
 0x415   : > { %869 = vadd.xlane.f32.xlu0 %v868_v32 }
 0x49e   : > { %v867_v33 = vpop.xlane.xlu0 %866 }
 0x49f   : > { %v871_v34 = vmul.f32 0.0009765625, %v867_v33 }
 0x4a1   : > { %v873_v36 = vmul.f32 %v871_v34, %v871_v34  ;;  %v875_v40 = vsub.f32 %v843_v5, %v871_v34  ;;  %v876_v41 = vsub.f32 %v844_v9, %v871_v34 }
 0x4a2   : > { %v870_v35 = vpop.xlane.xlu0 %869 }
 0x4a3   : > { %v872_v37 = vmul.f32 0.0009765625, %v870_v35 }
 0x4a5   : > { %v874_v38 = vsub.f32 %v872_v37, %v873_v36 }
 0x4a7   : > { %v877_v39 = vadd.f32 1e-05, %v874_v38 }
 0x4a9   : > { %1222 = vrsqrt.f32 %v877_v39 }
 0x4b3   : > { %v1223_v42 = vpop.eup %1222 }
 0x4b4   : > { %v879_v45 = vmul.f32 %v1223_v42, %v875_v40  ;;  %v880_v46 = vmul.f32 %v1223_v42, %v876_v41 }
 0x4b6   : > { %v883_v49 = vmul.f32 %v881_v43, %v879_v45  ;;  %v884_v50 = vmul.f32 %v882_v44, %v880_v46 }
 0x4b8   : > { %v887_v51 = vadd.f32 %v885_v47, %v883_v49  ;;  %v888_v52 = vadd.f32 %v886_v48, %v884_v50 }
 0x4ba   : > { %v889_v53 = vadd.f32 %v887_v51, %v1575_v16  ;;  %v890_v54 = vadd.f32 %v888_v52, %v1578_v17 }
 0x4bc   : > { %891 = vst.msk [vmem:[%s331_s25] sm:$0xff] %vm450_vm0, %v889_v53  ;;  %892 = vst.msk [vmem:[%s331_s25 + $0x8] sm:$0xff] %vm450_vm0, %v890_v54 }
 0x4bd   : > { %1293 = shalt.err (!%p1290_p11)
}
 0x4be   : > { %s1294_s21 = scalar_lea.hbm %s1670_s13, 256  ;;  %s1298_s22 = scalar_lea.hbm %s1727_s8, 512 }
 0x4bf   : > { %p1295_p13 = scmp.ne.s32.totalorder %s1670_s13, %s1294_s21  ;;  %p1299_p6 = scmp.lt.u32.totalorder %s1670_s13, %s1727_s8 }
 0x4c0   : > { %p1300_p9 = scmp.lt.u32.totalorder %s1298_s22, %s1294_s21  ;;  %p1302_p10 = scmp.lt.u32.totalorder %s1294_s21, %s1670_s13 }
 0x4c1   : > { %p1296_p0 = pnand %p1295_p13, %p1743_p1 }
 0x4c2   : > { %p1301_p12 = por %p1300_p9, %p1299_p6 }
 0x4c3   : > { %p1297_p5 = pneg %p1296_p0 }
 0x4c4   : > { %p1303_p2 = por %p1302_p10, %p1301_p12 }
 0x4c6   : > { %p1304_p3 = pnand %p1303_p2, %p1297_p5 }
 0x4c8   : > { %1307 = shalt.err (!%p1304_p3)
}
 0x4c9   : > { %s1362_s25 = smov 128   ;;  %s1363_s10 = smov 8  }
 0x4ca   : > { %1135 = dma.vmem_to_hbm [thread:$0]  (%p1743_p1), %s1672_s26, 256, %s1670_s13, %s1678_s9, %s1362_s25, %s1362_s25, %s1363_s10  }
 0x4cb PF: > { %p1152_p4 = scmp.ge.s32.totalorder %s1350_s30, 2  ;;  %s922_s12 = sand.u32 1, %s1338_s27  }
 0x4cc   : > { %p1744_p7 = scmp.ne.s32.totalorder %s1735_s16, 0  ;;  %s923_s18 = scalar_lea.sflag [#allocation4], %s922_s12 }
 0x4ce   : > { %p1145_p8 = pnand %p1152_p4, %p1744_p7 }
 0x4d0   : > { %1333 = dma.done.wait (!%p1145_p8), %s923_s18, 256  }
 0x4d1   : > { %1335 = vsyncadd (!%p1145_p8), %s923_s18, 4294967040  ;;  %s1745_s29 = sld [smem:[#allocation11_spill]]  ;;  %s1746_s14 = sld [smem:[#allocation12_spill]] }
 0x4d2   : > { %p20_p11 = scmp.ge.s32.totalorder %s1434_s11, 4   ;;  %s1747_s27 = smov %s1342_s28 }
 0x4d3   : > { %s1750_s30 = smov %s1434_s11 }
 0x4d4   :  { %22 = sbr.rel (!%p20_p11) target bundleno = 5 (0x5), region = 99 }
 0x4d7   : > { %s1748_s28 = smov %s1745_s29  ;;  %s1749_s29 = smov %s1746_s14 }
 0x4db   :  { %928 = vsyncpa [#allocation3], 1 }
 0x4dc   :  { %930 = vsyncpa [#allocation3 + $0x1], 1 }
 0x4dd   :  { %931 = vsyncpa [#allocation6], 1 }
 0x4de   :  { %932 = vsyncpa [#allocation4], 1 }
 0x4df   :  { %934 = vsyncpa [#allocation4 + $0x1], 1 }

</bundles_post_ra>
